<compile_context>
chip_gen: v7x
topology: tpu7x:2x2x1
jax: 0.10.0
libtpu: 0.0.40
codegen_flags: <defaults>
</compile_context>

<pallas_src>
import functools

import jax
import jax.numpy as jnp
from jax.experimental import pallas as pl
from jax.experimental.pallas import tpu as pltpu


_VMEM_LIMIT_BYTES = 48 * 1024 * 1024   # scoped limit we request from Mosaic
_TILE_BYTE_BUDGET = 28 * 1024 * 1024   # total double-buffered input budget


def _round_up(x, m):
    return -(-x // m) * m


def _pick_tile_rows(n, c, itemsize, with_alpha):
    """Rows per block, sized by bytes.

    Per-row double-buffered VMEM cost:
      logits row (c * itemsize)  +  lane-padded (tn,1) int32 targets row
      (128 * 4 bytes)  +  lane-padded (tn,1) f32 alpha row (128 * 4 bytes).
    Keeps >= 2-4 grid blocks for large n (megacore / 2-TC v7x) and tn a
    multiple of 8 (or == n when n < 8).
    """
    if n < 8:
        return max(1, n)
    side = 512 + (512 if with_alpha else 0)          # lane-padded (tn,1) bufs
    per_row_db = 2 * (c * itemsize + side)           # x2: double-buffered
    tn = _TILE_BYTE_BUDGET // per_row_db
    if n >= 64:
        tn = min(tn, pl.cdiv(n, 4))                  # >= 4 blocks when large
    elif n >= 16:
        tn = min(tn, pl.cdiv(n, 2))                  # >= 2 blocks
    tn = min(tn, n)
    tn = max(8, (tn // 8) * 8)
    return tn


def _focal_modulator(pt, gamma):
    """(1 - pt) ** gamma, specialized for the common integer gammas."""
    base = 1.0 - pt
    if gamma == 2.0:
        return base * base
    if gamma == 1.0:
        return jnp.maximum(base, 0.0)
    if gamma == 0.0:
        return jnp.ones_like(base)
    # General float gamma: clamp base (ce can round slightly negative -> pt>1).
    return jnp.power(jnp.maximum(base, 0.0), gamma)


def _focal_rows(logits_ref, targets_ref, alpha_ref, gamma):
    """Per-row focal loss for one (TN, C) tile. Returns (TN, 1) float32."""
    logits = logits_ref[...].astype(jnp.float32)            # (TN, C)
    tgt = targets_ref[...]                                   # (TN, 1) int32
    tn, c = logits.shape

    col = jax.lax.broadcasted_iota(jnp.int32, (tn, c), 1)
    is_tgt = col == tgt                                      # (TN, C) bool

    # Numerically-stable CE: lse(logits) - logits[target], reusing `shifted`
    # for both the exp-sum and the masked target select (single tile sweep).
    m = jnp.max(logits, axis=-1, keepdims=True)              # (TN, 1)
    shifted = logits - m                                     # (TN, C)
    sum_e = jnp.sum(jnp.exp(shifted), axis=-1, keepdims=True)
    tgt_shifted = jnp.sum(jnp.where(is_tgt, shifted, 0.0),
                          axis=-1, keepdims=True)            # logits[t] - m
    ce = jnp.log(sum_e) - tgt_shifted                        # (TN, 1)
    pt = jnp.exp(-ce)                                        # EUP, per-row

    focal = _focal_modulator(pt, gamma) * ce                 # (TN, 1)
    if alpha_ref is not None:
        # alpha already gathered per-sample in the wrapper: (TN, 1) f32.
        focal = alpha_ref[...].astype(jnp.float32) * focal
    return focal


def _focal_loss_partial_kernel(*refs, gamma, n_valid, has_alpha):
    """Per-block partial sum for reduction='mean'/'sum'."""
    if has_alpha:
        logits_ref, targets_ref, alpha_ref, out_ref = refs
    else:
        logits_ref, targets_ref, out_ref = refs
        alpha_ref = None
    focal = _focal_rows(logits_ref, targets_ref, alpha_ref, gamma)   # (TN, 1)
    tn = focal.shape[0]
    # Mask rows beyond the true batch size (ragged last block, no padding).
    row = pl.program_id(0) * tn + jax.lax.broadcasted_iota(jnp.int32, (tn, 1), 0)
    focal = jnp.where(row < n_valid, focal, 0.0)
    partial = jnp.sum(focal)
    out_ref[...] = jnp.broadcast_to(partial, out_ref.shape)          # (1, 8, 128)


def _focal_loss_none_kernel(*refs, gamma, has_alpha):
    """Per-sample focal loss for reduction='none'.

    Rows beyond the true batch size in the ragged last block are never
    written back (Pallas masks the OOB writeback); wrapper slices [:n].
    """
    if has_alpha:
        logits_ref, targets_ref, alpha_ref, out_ref = refs
    else:
        logits_ref, targets_ref, out_ref = refs
        alpha_ref = None
    out_ref[...] = _focal_rows(logits_ref, targets_ref, alpha_ref, gamma)


def multiclass_focal_loss(logits, targets, alpha=None, gamma=2.0,
                          reduction="mean"):
    """JAX/Pallas equivalent of MultiClassFocalLoss.forward.

    logits:  (N, C) float (kept in native dtype across the HBM boundary)
    targets: (N,)   int
    alpha:   None or per-class weights of shape (C,)
    """
    n, c = logits.shape
    gamma = float(gamma)
    has_alpha = alpha is not None

    targets_i32 = targets.astype(jnp.int32)
    targets2d = targets_i32.reshape(n, 1)

    itemsize = jnp.dtype(logits.dtype).itemsize
    tn = _pick_tile_rows(n, c, itemsize, has_alpha)
    num_blocks = pl.cdiv(n, tn)

    inputs = [logits, targets2d]
    in_specs = [
        pl.BlockSpec((tn, c), lambda i: (i, 0)),   # logits row-tile
        pl.BlockSpec((tn, 1), lambda i: (i, 0)),   # targets row-tile
    ]
    if has_alpha:
        alpha_arr = jnp.asarray(alpha, jnp.float32).reshape(c)
        # O(N) per-sample gather outside the kernel (kills the (TN,C)
        # select + cross-lane reduce that used to run per tile).
        alpha_t = alpha_arr[targets_i32].reshape(n, 1)
        inputs.append(alpha_t)
        in_specs.append(pl.BlockSpec((tn, 1), lambda i: (i, 0)))

    cp = pltpu.CompilerParams(
        dimension_semantics=("parallel",),
        vmem_limit_bytes=_VMEM_LIMIT_BYTES,
    )

    if reduction in ("mean", "sum"):
        kernel = functools.partial(_focal_loss_partial_kernel,
                                   gamma=gamma, n_valid=n, has_alpha=has_alpha)
        partials = pl.pallas_call(
            kernel,
            out_shape=jax.ShapeDtypeStruct((num_blocks, 8, 128), jnp.float32),
            grid=(num_blocks,),
            in_specs=in_specs,
            out_specs=pl.BlockSpec((1, 8, 128), lambda i: (i, 0, 0)),
            compiler_params=cp,
        )(*inputs)
        total = jnp.sum(partials[:, 0, 0])
        if reduction == "mean":
            return total / jnp.float32(n)
        return total
    elif reduction == "none":
        # TODO(synk): a lane-dense (num_blocks, tn) output layout would avoid
        # masked vst partial stores, but this path is not hot; keep (N, 1).
        kernel = functools.partial(_focal_loss_none_kernel,
                                   gamma=gamma, has_alpha=has_alpha)
        out = pl.pallas_call(
            kernel,
            out_shape=jax.ShapeDtypeStruct((n, 1), jnp.float32),
            grid=(num_blocks,),
            in_specs=in_specs,
            out_specs=pl.BlockSpec((tn, 1), lambda i: (i, 0)),
            compiler_params=cp,
        )(*inputs)
        return out[:, 0]
    else:
        raise ValueError(f"unknown reduction: {reduction}")


def _reference_focal_loss(logits, targets, alpha, gamma, reduction):
    """Pure-JAX reference mirroring the PyTorch forward."""
    logz = jax.nn.log_softmax(logits.astype(jnp.float32), axis=-1)
    ce = -jnp.take_along_axis(logz, targets[:, None].astype(jnp.int32),
                              axis=-1)[:, 0]
    pt = jnp.exp(-ce)
    a = 1.0 if alpha is None else jnp.asarray(alpha, jnp.float32)[targets]
    fl = a * (1.0 - pt) ** gamma * ce
    if reduction == "mean":
        return fl.mean()
    if reduction == "sum":
        return fl.sum()
    return fl


if __name__ == "__main__":
    key = jax.random.PRNGKey(0)
    k1, k2, k3, k4 = jax.random.split(key, 4)

    N, C = 8, 32
    logits = jax.random.normal(k1, (N, C), dtype=jnp.float32)
    targets = jax.random.randint(k2, (N,), 0, C, dtype=jnp.int32)
    alpha = 0.5 + 0.5 * jnp.arange(C, dtype=jnp.float32) / C
    gamma = 2.0

    # 1) mean, with per-class alpha.
    loss = multiclass_focal_loss(logits, targets, alpha=alpha, gamma=gamma,
                                 reduction="mean")
    jax.block_until_ready(loss)
    ref = _reference_focal_loss(logits, targets, alpha, gamma, "mean")
    assert jnp.allclose(loss, ref, rtol=1e-5, atol=1e-6), (loss, ref)

    # 2) mean, alpha=None path (no alpha input at all).
    loss_na = multiclass_focal_loss(logits, targets, alpha=None, gamma=gamma,
                                    reduction="mean")
    jax.block_until_ready(loss_na)
    ref_na = _reference_focal_loss(logits, targets, None, gamma, "mean")
    assert jnp.allclose(loss_na, ref_na, rtol=1e-5, atol=1e-6), (loss_na, ref_na)

    # 3) sum, ragged last block exercised (N not a multiple of 8, no padding).
    N2 = 13
    logits2 = jax.random.normal(k3, (N2, C), dtype=jnp.float32)
    targets2 = jax.random.randint(k4, (N2,), 0, C, dtype=jnp.int32)
    loss_sum = multiclass_focal_loss(logits2, targets2, alpha=alpha,
                                     gamma=gamma, reduction="sum")
    jax.block_until_ready(loss_sum)
    ref_sum = _reference_focal_loss(logits2, targets2, alpha, gamma, "sum")
    assert jnp.allclose(loss_sum, ref_sum, rtol=1e-5, atol=1e-6), (loss_sum, ref_sum)

    # 4) reduction='none' (per-sample losses), including a ragged-block case.
    loss_none = multiclass_focal_loss(logits, targets, alpha=alpha,
                                      gamma=gamma, reduction="none")
    jax.block_until_ready(loss_none)
    ref_none = _reference_focal_loss(logits, targets, alpha, gamma, "none")
    assert jnp.allclose(loss_none, ref_none, rtol=1e-5, atol=1e-6)

    loss_none2 = multiclass_focal_loss(logits2, targets2, alpha=alpha,
                                       gamma=gamma, reduction="none")
    jax.block_until_ready(loss_none2)
    ref_none2 = _reference_focal_loss(logits2, targets2, alpha, gamma, "none")
    assert jnp.allclose(loss_none2, ref_none2, rtol=1e-5, atol=1e-6)

    # 5) bf16 logits stay bf16 across the HBM boundary (cast inside kernel).
    logits_bf16 = logits.astype(jnp.bfloat16)
    loss_bf16 = multiclass_focal_loss(logits_bf16, targets, alpha=alpha,
                                      gamma=gamma, reduction="mean")
    jax.block_until_ready(loss_bf16)
    ref_bf16 = _reference_focal_loss(logits_bf16, targets, alpha, gamma, "mean")
    assert jnp.allclose(loss_bf16, ref_bf16, rtol=1e-4, atol=1e-5)

    print("KERNEL_OK")
</pallas_src>

<mosaic_0001>
module attributes {stable_mosaic.version = 11 : i64} {
  func.func @_focal_loss_partial_kernel(%arg0: i32, %arg1: memref<8x32xf32, #tpu.memory_space<vmem>>, %arg2: memref<8x1xi32, #tpu.memory_space<vmem>>, %arg3: memref<8x1xf32, #tpu.memory_space<vmem>>, %arg4: memref<1x8x128xf32, #tpu.memory_space<vmem>>) attributes {dimension_semantics = [#tpu.dimension_semantics<parallel>], iteration_bounds = array<i64: 1>, scalar_prefetch = 0 : i64, scratch_operands = 0 : i64, tpu.core_type = #tpu.core_type<tc>, window_params = [{transform_indices = @transform_0, window_bounds = array<i64: 8, 32>}, {transform_indices = @transform_1, window_bounds = array<i64: 8, 1>}, {transform_indices = @transform_2, window_bounds = array<i64: 8, 1>}, {transform_indices = @transform_3, window_bounds = array<i64: 1, 8, 128>}]} {
    %c0 = arith.constant 0 : index
    %c0_0 = arith.constant 0 : index
    %0 = vector.load %arg1[%c0, %c0_0] : memref<8x32xf32, #tpu.memory_space<vmem>>, vector<8x32xf32>
    %c0_1 = arith.constant 0 : index
    %c0_2 = arith.constant 0 : index
    %1 = vector.load %arg2[%c0_1, %c0_2] : memref<8x1xi32, #tpu.memory_space<vmem>>, vector<8x1xi32>
    %2 = tpu.iota {dimensions = array<i32: 1>} : vector<8x32xi32>
    %3 = vector.broadcast %1 : vector<8x1xi32> to vector<8x32xi32>
    %4 = arith.cmpi eq, %2, %3 : vector<8x32xi32>
    %cst = arith.constant dense<0xFF800000> : vector<8xf32>
    %5 = vector.multi_reduction <maximumf>, %0, %cst [1] : vector<8x32xf32> to vector<8xf32>
    %6 = vector.shape_cast %5 : vector<8xf32> to vector<8x1xf32>
    %7 = vector.broadcast %6 : vector<8x1xf32> to vector<8x32xf32>
    %8 = arith.subf %0, %7 : vector<8x32xf32>
    %9 = math.exp %8 : vector<8x32xf32>
    %cst_3 = arith.constant dense<0.000000e+00> : vector<8xf32>
    %10 = vector.multi_reduction <add>, %9, %cst_3 [1] : vector<8x32xf32> to vector<8xf32>
    %11 = vector.shape_cast %10 : vector<8xf32> to vector<8x1xf32>
    %cst_4 = arith.constant 0.000000e+00 : f32
    %12 = vector.broadcast %cst_4 : f32 to vector<8x32xf32>
    %13 = arith.select %4, %8, %12 : vector<8x32xi1>, vector<8x32xf32>
    %cst_5 = arith.constant dense<0.000000e+00> : vector<8xf32>
    %14 = vector.multi_reduction <add>, %13, %cst_5 [1] : vector<8x32xf32> to vector<8xf32>
    %15 = vector.shape_cast %14 : vector<8xf32> to vector<8x1xf32>
    %16 = math.log %11 : vector<8x1xf32>
    %17 = arith.subf %16, %15 : vector<8x1xf32>
    %cst_6 = arith.constant 0.000000e+00 : f32
    %18 = vector.broadcast %cst_6 : f32 to vector<8x1xf32>
    %19 = arith.subf %18, %17 : vector<8x1xf32>
    %20 = math.exp %19 : vector<8x1xf32>
    %cst_7 = arith.constant 1.000000e+00 : f32
    %21 = vector.broadcast %cst_7 : f32 to vector<8x1xf32>
    %22 = arith.subf %21, %20 : vector<8x1xf32>
    %23 = arith.mulf %22, %22 : vector<8x1xf32>
    %24 = arith.mulf %23, %17 : vector<8x1xf32>
    %c0_8 = arith.constant 0 : index
    %c0_9 = arith.constant 0 : index
    %25 = vector.load %arg3[%c0_8, %c0_9] : memref<8x1xf32, #tpu.memory_space<vmem>>, vector<8x1xf32>
    %26 = arith.mulf %25, %24 : vector<8x1xf32>
    %c8_i32 = arith.constant 8 : i32
    %27 = arith.muli %arg0, %c8_i32 : i32
    %28 = tpu.iota {dimensions = array<i32: 0>} : vector<8x1xi32>
    %29 = vector.broadcast %27 : i32 to vector<8x1xi32>
    %30 = arith.addi %29, %28 : vector<8x1xi32>
    %c8_i32_10 = arith.constant 8 : i32
    %31 = vector.broadcast %c8_i32_10 : i32 to vector<8x1xi32>
    %32 = arith.cmpi slt, %30, %31 : vector<8x1xi32>
    %cst_11 = arith.constant 0.000000e+00 : f32
    %33 = vector.broadcast %cst_11 : f32 to vector<8x1xf32>
    %34 = arith.select %32, %26, %33 : vector<8x1xi1>, vector<8x1xf32>
    %35 = vector.shape_cast %34 : vector<8x1xf32> to vector<1x8x1xf32>
    %cst_12 = arith.constant dense<0.000000e+00> : vector<1xf32>
    %36 = vector.multi_reduction <add>, %35, %cst_12 [1, 2] : vector<1x8x1xf32> to vector<1xf32>
    %37 = vector.shape_cast %36 : vector<1xf32> to vector<1x1x1xf32>
    %38 = vector.extract %37[0, 0, 0] : f32 from vector<1x1x1xf32>
    %39 = vector.broadcast %38 : f32 to vector<1x8x128xf32>
    %c0_13 = arith.constant 0 : index
    %c0_14 = arith.constant 0 : index
    %c0_15 = arith.constant 0 : index
    %40 = vector.load %arg4[%c0_13, %c0_14, %c0_15] : memref<1x8x128xf32, #tpu.memory_space<vmem>>, vector<1x8x128xf32>
    tpu.vector_store %arg4[%c0_13, %c0_14, %c0_15], %39 {strides = array<i32>} : memref<1x8x128xf32, #tpu.memory_space<vmem>>, vector<1x8x128xf32>,
    return
  }
  func.func @transform_0(%arg0: i32) -> (i32, i32) {
    %c0_i32 = arith.constant 0 : i32
    %c0_i32_0 = arith.constant 0 : i32
    return %arg0, %c0_i32 : i32, i32
  }
  func.func @transform_1(%arg0: i32) -> (i32, i32) {
    %c0_i32 = arith.constant 0 : i32
    %c0_i32_0 = arith.constant 0 : i32
    return %arg0, %c0_i32 : i32, i32
  }
  func.func @transform_2(%arg0: i32) -> (i32, i32) {
    %c0_i32 = arith.constant 0 : i32
    %c0_i32_0 = arith.constant 0 : i32
    return %arg0, %c0_i32 : i32, i32
  }
  func.func @transform_3(%arg0: i32) -> (i32, i32, i32) {
    %c0_i32 = arith.constant 0 : i32
    %c0_i32_0 = arith.constant 0 : i32
    %c0_i32_1 = arith.constant 0 : i32
    return %arg0, %c0_i32, %c0_i32_0 : i32, i32, i32
  }
}

</mosaic_0001>

<bundles_post_ra>
// kernel: tpu_custom_call.1
= control target key start
LH: loop header
LB: loop body
LE: loop exit
PB: predicated region body
PF: predicated region fallthrough
CT: control target
= control target key end

     0   :  { %vm23_vm0 = vcmask 261120   ;;  %s163_s0 = inlined_call_operand.vmem [shape: f32[8,32], index: 0, kind: input, shape index: {}]   ;;  %s164_s1 = inlined_call_operand.vmem [shape: s32[8,1], index: 1, kind: input, shape index: {}]   ;;  %s165_s2 = inlined_call_operand.vmem [shape: f32[8,1], index: 2, kind: input, shape index: {}]   ;;  %s166_s3 = inlined_call_operand.hbm [shape: f32[1,8,128], index: 3, kind: output, shape index: {}]  }
   0x1   :  { %v15_v0 = vld [vmem:[%s163_s0] sm:$0xff] }
   0x2   :  { %8 = vsyncpa [#allocation3], 0  ;;  %v24_v1 = vsel %vm23_vm0, %v15_v0, -inf  ;;  %v117_v2 = vmov 0   ;;  %v16_v3 = vld [vmem:[%s164_s1] sm:$0xff]  ;;  %v17_v7 = vlaneseq  ;;  %vm55_vm2 = vcmask 7168  }
   0x3   :  { %86 = vset.pattern.permute.xlu0 %v117_v2  ;;  %v46_v24 = vld [vmem:[%s165_s2] sm:$0xff]  ;;  %s118_s16 = smov [#allocation2]  }
   0x4   :  { %25 = vmax.xlane.f32.xlu0 %v24_v1  ;;  %v18_v8 = vand.u32 127, %v17_v7  ;;  %s74_s17 = sshll.u32 %s118_s16, 4  ;;  %s75_s17 = int_to_ptr.vmem [resolvable:$true] %s74_s17 }
   0x5   :  { %s93_s2 = scalar_lea.vmem %s75_s17, 128  ;;  %p98_p1 = scmp.lt.s32.totalorder %s75_s17, %s75_s17 }
   0x6   :  { %p94_p0 = scmp.ne.s32.totalorder %s75_s17, %s93_s2  ;;  %p99_p2 = scmp.lt.s32.totalorder %s93_s2, %s93_s2 }
   0x8   :  { %p100_p3 = por %p99_p2, %p98_p1 }
   0xa   :  { %p101_p4 = pnand %p100_p3, %p94_p0 }
  0x1a   :  { %20 = vperm.xlu0 %86, %v16_v3  }
  0x91   :  { %v26_v4 = vpop.xlane.xlu0 %25 }
  0x92   :  { %v27_v5 = vsub.f32 %v15_v0, %v26_v4 }
  0x94   :  { %v28_v6 = vmul.f32 1.442695, %v27_v5 }
  0x96   :  { %87 = vpow2.f32 %v28_v6 }
  0x99   :  { %v21_v9 = vpop.permute.xlu0 %20 }
  0x9a   :  { %vm22_vm1 = vcmp.eq.s32.totalorder %v18_v8, %v21_v9 }
  0x9b   :  { %v33_v12 = vsel %vm22_vm1, %v27_v5, 0.0 }
  0x9c   :  { %v34_v13 = vsel %vm23_vm0, %v33_v12, 0.0 }
  0xa0   :  { %v88_v10 = vpop.eup %87 }
  0xa1   :  { %v30_v11 = vsel %vm23_vm0, %v88_v10, 0.0 }
  0xa2   :  { %31 = vadd.xlane.f32.xlu1 %v30_v11 }
  0xa6   :  { %35 = vadd.xlane.f32.xlu1 %v34_v13 }
 0x12f   :  { %v32_v14 = vpop.xlane.xlu1 %31 }
 0x130   :  { %89 = vlog2.f32 %v32_v14 }
 0x133   :  { %v36_v17 = vpop.xlane.xlu1 %35 }
 0x13a   :  { %v90_v15 = vpop.eup %89 }
 0x13b   :  { %v38_v16 = vmul.f32 0.6931472, %v90_v15 }
 0x13d   :  { %v39_v18 = vsub.f32 %v38_v16, %v36_v17 }
 0x13f   :  { %v40_v19 = vsub.f32 0.0, %v39_v18 }
 0x141   :  { %v41_v20 = vmul.f32 1.442695, %v40_v19 }
 0x143   :  { %91 = vpow2.f32 %v41_v20 }
 0x14d   :  { %v92_v21 = vpop.eup %91 }
 0x14e   :  { %v43_v22 = vsub.f32 1.0, %v92_v21 }
 0x150   :  { %v44_v23 = vmul.f32 %v43_v22, %v43_v22 }
 0x152   :  { %v45_v25 = vmul.f32 %v44_v23, %v39_v18 }
 0x154   :  { %v47_v26 = vmul.f32 %v46_v24, %v45_v25 }
 0x156   :  { %v56_v27 = vsel %vm55_vm2, %v47_v26, 0.0 }
 0x157   :  { %57 = vadd.xlane.f32.xlu1 %v56_v27 }
 0x1e4   :  { %v58_v28 = vpop.xlane.xlu1 %57 }
 0x1e5   :  { %v59_v29 = vrot.slane %v58_v28, 4 }
 0x1e7   :  { %v60_v30 = vadd.f32 %v59_v29, %v58_v28 }
 0x1e9   :  { %v61_v31 = vrot.slane %v60_v30, 2 }
 0x1eb   :  { %v62_v32 = vadd.f32 %v61_v31, %v60_v30 }
 0x1ed   :  { %v63_v33 = vrot.slane %v62_v32, 1 }
 0x1ef   :  { %v64_v34 = vadd.f32 %v63_v33, %v62_v32 }
 0x1f1   :  { %82 = vpush %v64_v34 }
 0x222   :  { %s83_s18 = spop %82 }
 0x223   :  { %v66_v35 = vstv %s83_s18 }
 0x224   :  { %67 = vst [vmem:[#allocation2] sm:$0xff] %v66_v35 }
 0x225   :  { %104 = shalt.err (!%p101_p4)
}
 0x226   :  { %s105_s21 = scalar_lea.hbm %s166_s3, 128 }
 0x227   :  { %p106_p5 = scmp.ne.s32.totalorder %s166_s3, %s105_s21  ;;  %p109_p6 = scmp.lt.u32.totalorder %s105_s21, %s166_s3 }
 0x229   :  { %p111_p7 = pnand %p109_p6, %p106_p5 }
 0x22b   :  { %114 = shalt.err (!%p111_p7)
}
 0x22c   :  { %77 = dma.vmem_to_hbm [thread:$0]  %s75_s17, 128, %s166_s3, [#allocation3]  }
 0x22d   :  { %115 = dma.done.wait [#allocation3], 128  }
 0x22e   :  { %116 = vsyncadd [#allocation3], 4294967168 }
 0x22f   :  { %81 = vsyncpa [#allocation3], 1 }

</bundles_post_ra>
